<compile_context>
chip_gen: v5e
topology: v5e:2x2
jax: 0.10.0
libtpu: 0.0.40
codegen_flags: <defaults>
</compile_context>

<pallas_src>
import functools

import jax
import jax.numpy as jnp
from jax.experimental import pallas as pl
from jax.experimental.pallas import tpu as pltpu


def _vmem_capacity_bytes():
    """Chip VMEM capacity; conservative (v7x per-core) fallback off-TPU."""
    try:
        return int(pltpu.get_tpu_info().vmem_capacity_bytes)
    except Exception:
        return 64 << 20


def _label_smoothing_kernel(x_ref, tgt_ref, loss_ref, *, n_rows, block_rows,
                            padding_idx, smoothing, confidence,
                            resident_targets):
    """One row tile of label-smoothed cross entropy.

    x_ref:    (TM, V) logits tile (native dtype, cast to f32 here).
    tgt_ref:  (padded_N, 1) resident targets OR (TM, 1) per-step target block.
    loss_ref: (1, 8, 128) f32 slab holding this tile's partial loss sum
              (broadcast, dense store; wrapper reads [.., 0, 0]).
    """
    i = pl.program_id(0)
    x = x_ref[...].astype(jnp.float32)                                  # (TM, V)
    tm, v = x.shape

    if resident_targets:
        start = pl.multiple_of(i * block_rows, block_rows)
        tgt = tgt_ref[pl.ds(start, block_rows), :]                      # (TM, 1)
    else:
        tgt = tgt_ref[...]                                              # (TM, 1)

    # Numerically stable logsumexp.
    m = jnp.max(x, axis=-1, keepdims=True)                              # (TM, 1)
    shifted = x - m                                                     # (TM, V)
    lse = jnp.log(jnp.sum(jnp.exp(shifted), axis=-1, keepdims=True))    # (TM, 1)
    # TODO(synk): if a bundle dump shows VALU/XLU still binding for bf16 inputs,
    # push this exp-sum onto the idle MXU via a (TM,V)x(V,1) ones-matmul.

    # Fused weighted reduction. For non-pad rows the weights sum to 1
    # (smooth*(V-2) + confidence), so:
    #   -sum_c w_c * logp_c = lse - sum_c w_c * shifted_c
    smooth_val = jnp.float32(smoothing / (v - 2))
    col = jax.lax.broadcasted_iota(jnp.int32, (tm, v), 1)
    w = jnp.where(col == tgt, jnp.float32(confidence), smooth_val)
    w = jnp.where(col == padding_idx, jnp.float32(0.0), w)
    weighted = jnp.sum(w * shifted, axis=-1, keepdims=True)             # (TM, 1)
    per_row = lse - weighted                                            # (TM, 1)

    # Zero pad-target rows, and rows past N in the (possibly partial) last tile.
    row = i * block_rows + jax.lax.broadcasted_iota(jnp.int32, (tm, 1), 0)
    valid = jnp.logical_and(row < n_rows, tgt != padding_idx)
    per_row = jnp.where(valid, per_row, jnp.float32(0.0))

    # Per-tile partial sum, broadcast into a full (8,128) slab so the store is a
    # dense (unmasked) vreg write and the wrapper reduces only num_tiles scalars.
    tile_sum = jnp.sum(per_row, axis=0, keepdims=True)                  # (1, 1)
    loss_ref[...] = jnp.broadcast_to(tile_sum[None, :, :], loss_ref.shape)


def _choose_block_rows(n, v, itemsize):
    """Row tile: multiple of 8 sublanes, chip-aware VMEM budget, >=8 grid steps."""
    min_rows = max(8, 32 // max(itemsize, 1))      # 8 for f32, 16 for bf16
    if n <= min_rows:
        return n
    vmem_cap = _vmem_capacity_bytes()
    # Budget covers the double-buffered input tile plus ~3 f32 (TM, V)
    # intermediates (shifted / exp / weights); capped so v7x (64 MiB VMEM)
    # keeps full double-buffering while v5e/v6e can still use large tiles.
    budget = min(int(vmem_cap * 0.6), 48 << 20)

    def footprint(tm):
        return 2 * tm * v * itemsize + 3 * tm * v * 4

    tm = min_rows
    while (tm * 2 <= n and footprint(tm * 2) <= budget
           and pl.cdiv(n, tm * 2) >= 8):            # keep >=8 steps for megacore
        tm *= 2
    return tm


def label_smoothing_loss(x, target, *, size, padding_idx, smoothing,
                         block_rows=None):
    """x: (N, size) logits (any float dtype); target: (N,) int class ids.
    Returns scalar f32 loss (CrossEntropyLoss mean over all N rows)."""
    assert x.ndim == 2 and x.shape[1] == size
    assert size > 2, "smoothing / (size - 2) requires size > 2"
    n, v = x.shape
    confidence = 1.0 - smoothing

    itemsize = jnp.dtype(x.dtype).itemsize
    tm = block_rows if block_rows is not None else _choose_block_rows(n, v, itemsize)
    tm = max(1, min(tm, n))
    num_tiles = pl.cdiv(n, tm)
    padded_n = num_tiles * tm

    tgt2d = target.astype(jnp.int32).reshape(n, 1)

    # Targets: keep the whole (padded_N, 1) array resident in VMEM (one DMA
    # total instead of a tiny DMA per grid step) when its lane-padded footprint
    # is small; otherwise fall back to per-step (TM, 1) blocks.
    resident_targets = padded_n * 512 <= (2 << 20)   # (padded_N,1) pads lanes to 128
    if resident_targets:
        if padded_n != n:
            tgt2d = jnp.pad(tgt2d, ((0, padded_n - n), (0, 0)),
                            constant_values=padding_idx)
        tgt_spec = pl.BlockSpec((padded_n, 1), lambda i: (0, 0))
    else:
        tgt_spec = pl.BlockSpec((tm, 1), lambda i: (i, 0))

    kernel = functools.partial(
        _label_smoothing_kernel,
        n_rows=n, block_rows=tm, padding_idx=padding_idx,
        smoothing=smoothing, confidence=confidence,
        resident_targets=resident_targets)

    vmem_cap = _vmem_capacity_bytes()
    vmem_limit = max(32 << 20, min(int(vmem_cap * 0.875), 112 << 20))

    cost = pl.CostEstimate(
        flops=8 * n * v,
        transcendentals=n * v,                              # exp per element
        bytes_accessed=n * v * itemsize + n * 4 + num_tiles * 8 * 128 * 4)

    partials = pl.pallas_call(
        kernel,
        out_shape=jax.ShapeDtypeStruct((num_tiles, 8, 128), jnp.float32),
        grid=(num_tiles,),
        in_specs=[
            pl.BlockSpec((tm, v), lambda i: (i, 0)),        # logits row tile
            tgt_spec,                                       # targets
        ],
        out_specs=pl.BlockSpec((1, 8, 128), lambda i: (i, 0, 0)),
        compiler_params=pltpu.CompilerParams(
            dimension_semantics=("parallel",),              # megacore-shardable
            vmem_limit_bytes=vmem_limit),
        cost_estimate=cost,
    )(x, tgt2d)

    # CrossEntropyLoss(reduction='mean') with soft targets: divide by N.
    # Pad-target rows contribute 0 to the numerator but still count in the mean.
    return jnp.sum(partials[:, 0, 0]) / jnp.float32(n)

    # TODO(synk): for very large vocabularies (V >= ~64k on v7x) add a second
    # grid axis over V with an online logsumexp so TM stays large on 64 MiB VMEM.
    # TODO(synk): for tiny class counts (V < 128) pad V to 128 lanes (or fold
    # rows into the lane dim) to avoid wasting 3/4 of every vreg/DMA burst.


def _reference(x, target, *, size, padding_idx, smoothing):
    """Pure-JAX reference mirroring the PyTorch forward."""
    confidence = 1.0 - smoothing
    n, v = x.shape
    col = jnp.arange(v)[None, :]
    tgt = target[:, None]
    true_dist = jnp.where(col == tgt, confidence, smoothing / (size - 2))
    true_dist = jnp.where(col == padding_idx, 0.0, true_dist)
    true_dist = jnp.where(tgt == padding_idx, 0.0, true_dist)
    logp = jax.nn.log_softmax(x.astype(jnp.float32), axis=-1)
    return jnp.mean(-jnp.sum(true_dist * logp, axis=-1))


if __name__ == "__main__":
    SIZE = 32          # vocabulary / class count (x.size(1))
    N = 64             # number of examples (batch * seq)
    PADDING_IDX = 0
    SMOOTHING = 0.1

    key = jax.random.PRNGKey(0)
    kx, kt = jax.random.split(key)
    x = jax.random.normal(kx, (N, SIZE), dtype=jnp.float32)
    target = jax.random.randint(kt, (N,), 0, SIZE, dtype=jnp.int32)
    # Exercise the pad-row masking path.
    target = target.at[3].set(PADDING_IDX)
    target = target.at[17].set(PADDING_IDX)

    loss = label_smoothing_loss(
        x, target, size=SIZE, padding_idx=PADDING_IDX, smoothing=SMOOTHING)
    loss = jax.block_until_ready(loss)

    ref = _reference(
        x, target, size=SIZE, padding_idx=PADDING_IDX, smoothing=SMOOTHING)
    assert jnp.allclose(loss, ref, rtol=1e-5, atol=1e-5), (loss, ref)

    print("KERNEL_OK")
</pallas_src>

<mosaic_0001>
module attributes {stable_mosaic.version = 11 : i64} {
  func.func @_label_smoothing_kernel(%arg0: i32, %arg1: memref<8x32xf32, #tpu.memory_space<vmem>>, %arg2: memref<64x1xi32, #tpu.memory_space<vmem>>, %arg3: memref<1x8x128xf32, #tpu.memory_space<vmem>>) attributes {dimension_semantics = [#tpu.dimension_semantics<parallel>], iteration_bounds = array<i64: 8>, scalar_prefetch = 0 : i64, scratch_operands = 0 : i64, tpu.core_type = #tpu.core_type<tc>, window_params = [{transform_indices = @transform_0, window_bounds = array<i64: 8, 32>}, {pipeline_mode = #tpu.pipeline_mode<synchronous>, transform_indices = @transform_1, window_bounds = array<i64: 64, 1>}, {transform_indices = @transform_2, window_bounds = array<i64: 1, 8, 128>}]} {
    %c0 = arith.constant 0 : index
    %c0_0 = arith.constant 0 : index
    %0 = vector.load %arg1[%c0, %c0_0] : memref<8x32xf32, #tpu.memory_space<vmem>>, vector<8x32xf32>
    %c8_i32 = arith.constant 8 : i32
    %1 = arith.muli %arg0, %c8_i32 : i32
    %2 = tpu.assume_multiple %1, 8 : i32
    %3 = arith.index_cast %2 : i32 to index
    %c0_1 = arith.constant 0 : index
    %4 = vector.load %arg2[%3, %c0_1] : memref<64x1xi32, #tpu.memory_space<vmem>>, vector<8x1xi32>
    %cst = arith.constant dense<0xFF800000> : vector<8xf32>
    %5 = vector.multi_reduction <maximumf>, %0, %cst [1] : vector<8x32xf32> to vector<8xf32>
    %6 = vector.shape_cast %5 : vector<8xf32> to vector<8x1xf32>
    %7 = vector.broadcast %6 : vector<8x1xf32> to vector<8x32xf32>
    %8 = arith.subf %0, %7 : vector<8x32xf32>
    %9 = math.exp %8 : vector<8x32xf32>
    %cst_2 = arith.constant dense<0.000000e+00> : vector<8xf32>
    %10 = vector.multi_reduction <add>, %9, %cst_2 [1] : vector<8x32xf32> to vector<8xf32>
    %11 = vector.shape_cast %10 : vector<8xf32> to vector<8x1xf32>
    %12 = math.log %11 : vector<8x1xf32>
    %13 = tpu.iota {dimensions = array<i32: 1>} : vector<8x32xi32>
    %14 = vector.broadcast %4 : vector<8x1xi32> to vector<8x32xi32>
    %15 = arith.cmpi eq, %13, %14 : vector<8x32xi32>
    %cst_3 = arith.constant 0.899999976 : f32
    %cst_4 = arith.constant 0.00333333341 : f32
    %16 = vector.broadcast %cst_3 : f32 to vector<8x32xf32>
    %17 = vector.broadcast %cst_4 : f32 to vector<8x32xf32>
    %18 = arith.select %15, %16, %17 : vector<8x32xi1>, vector<8x32xf32>
    %c0_i32 = arith.constant 0 : i32
    %19 = vector.broadcast %c0_i32 : i32 to vector<8x32xi32>
    %20 = arith.cmpi eq, %13, %19 : vector<8x32xi32>
    %cst_5 = arith.constant 0.000000e+00 : f32
    %21 = vector.broadcast %cst_5 : f32 to vector<8x32xf32>
    %22 = arith.select %20, %21, %18 : vector<8x32xi1>, vector<8x32xf32>
    %23 = arith.mulf %22, %8 : vector<8x32xf32>
    %cst_6 = arith.constant dense<0.000000e+00> : vector<8xf32>
    %24 = vector.multi_reduction <add>, %23, %cst_6 [1] : vector<8x32xf32> to vector<8xf32>
    %25 = vector.shape_cast %24 : vector<8xf32> to vector<8x1xf32>
    %26 = arith.subf %12, %25 : vector<8x1xf32>
    %c8_i32_7 = arith.constant 8 : i32
    %27 = arith.muli %arg0, %c8_i32_7 : i32
    %28 = tpu.iota {dimensions = array<i32: 0>} : vector<8x1xi32>
    %29 = vector.broadcast %27 : i32 to vector<8x1xi32>
    %30 = arith.addi %29, %28 : vector<8x1xi32>
    %c64_i32 = arith.constant 64 : i32
    %31 = vector.broadcast %c64_i32 : i32 to vector<8x1xi32>
    %32 = arith.cmpi slt, %30, %31 : vector<8x1xi32>
    %c0_i32_8 = arith.constant 0 : i32
    %33 = vector.broadcast %c0_i32_8 : i32 to vector<8x1xi32>
    %34 = arith.cmpi ne, %4, %33 : vector<8x1xi32>
    %35 = arith.andi %32, %34 : vector<8x1xi1>
    %cst_9 = arith.constant 0.000000e+00 : f32
    %36 = vector.broadcast %cst_9 : f32 to vector<8x1xf32>
    %37 = arith.select %35, %26, %36 : vector<8x1xi1>, vector<8x1xf32>
    %cst_10 = arith.constant dense<0.000000e+00> : vector<1xf32>
    %38 = vector.multi_reduction <add>, %37, %cst_10 [0] : vector<8x1xf32> to vector<1xf32>
    %39 = vector.shape_cast %38 : vector<1xf32> to vector<1x1xf32>
    %40 = vector.shape_cast %39 : vector<1x1xf32> to vector<1x1x1xf32>
    %41 = vector.shape_cast %40 : vector<1x1x1xf32> to vector<1x1x1xf32>
    %42 = vector.broadcast %41 : vector<1x1x1xf32> to vector<1x8x128xf32>
    %c0_11 = arith.constant 0 : index
    %c0_12 = arith.constant 0 : index
    %c0_13 = arith.constant 0 : index
    %43 = vector.load %arg3[%c0_11, %c0_12, %c0_13] : memref<1x8x128xf32, #tpu.memory_space<vmem>>, vector<1x8x128xf32>
    tpu.vector_store %arg3[%c0_11, %c0_12, %c0_13], %42 {strides = array<i32>} : memref<1x8x128xf32, #tpu.memory_space<vmem>>, vector<1x8x128xf32>,
    return
  }
  func.func @transform_0(%arg0: i32) -> (i32, i32) {
    %c0_i32 = arith.constant 0 : i32
    %c0_i32_0 = arith.constant 0 : i32
    return %arg0, %c0_i32 : i32, i32
  }
  func.func @transform_1(%arg0: i32) -> (i32, i32) {
    %c0_i32 = arith.constant 0 : i32
    %c0_i32_0 = arith.constant 0 : i32
    %c0_i32_1 = arith.constant 0 : i32
    return %c0_i32, %c0_i32_0 : i32, i32
  }
  func.func @transform_2(%arg0: i32) -> (i32, i32, i32) {
    %c0_i32 = arith.constant 0 : i32
    %c0_i32_0 = arith.constant 0 : i32
    %c0_i32_1 = arith.constant 0 : i32
    return %arg0, %c0_i32, %c0_i32_0 : i32, i32, i32
  }
}

</mosaic_0001>

<bundles_post_ra>
// kernel: tpu_custom_call.1
= control target key start
LH: loop header
LB: loop body
LE: loop exit
PB: predicated region body
PF: predicated region fallthrough
CT: control target
= control target key end

     0   :  { %7 = vsyncpa [#allocation3], 0  ;;  %s497_s0 = inlined_call_operand.vmem [shape: f32[64,32], index: 0, kind: input, shape index: {}]   ;;  %s498_s1 = inlined_call_operand.vmem [shape: s32[64,1], index: 1, kind: input, shape index: {}]   ;;  %s499_s2 = inlined_call_operand.hbm [shape: f32[8,8,128], index: 2, kind: output, shape index: {}]  }
   0x1   :  { %9 = vsyncpa [#allocation3 + $0x1], 0  ;;  %s407_s9 = smov 0   ;;  %s409_s10 = smov 0  }
   0x2   :  { %s411_s11 = smov 0   ;;  %s413_s12 = smov 0  }
   0x3 LB: > { %s267_s13 = sadd.s32 4294967295, %s388_s12   ;;  %s268_s14 = sadd.s32 4294967294, %s388_s12   ;;  %s388_s12 = sphi %s413_s12, %s505_s12   ;;  %s384_s11 = sphi %s411_s11, %s504_s11   ;;  %s380_s10 = sphi %s409_s10, %s503_s10   ;;  %s376_s9 = sphi %s407_s9, %s502_s9  }
   0x4   : > { %s430_s15 = sadd.s32 1, %s388_s12   ;;  %s69_s16 = sadd.s32 1, %s384_s11 }
   0x5   : > { %s66_s17 = ssub.s32 %s388_s12, %s430_s15  ;;  %p79_p0 = scmp.ne.s32.totalorder %s384_s11, %s380_s10 }
   0x6   : > { %p67_p1 = scmp.eq.s32.totalorder %s66_s17, 0  ;;  %p80_p2 = scmp.eq.s32.totalorder %s267_s13, 7 }
   0x7   : > { %p85_p3 = scmp.ne.s32.totalorder %s380_s10, %s376_s9  ;;  %p86_p4 = scmp.eq.s32.totalorder %s268_s14, 7 }
   0x8   : > { %s440_s18 = scalar_select %p67_p1, %s384_s11, %s69_s16  }
   0x9   : > { %p442_p5 = por %p80_p2, %p79_p0  ;;  %p446_p6 = por %p86_p4, %p85_p3 }
   0xa   : > { %p271_p7 = scmp.ge.s32.totalorder %s388_s12, 1  ;;  %p114_p8 = scmp.lt.s32.totalorder %s388_s12, 9 }
   0xc   : > { %p115_p9 = pnand %p271_p7, %p114_p8 }
   0xd   : > { %p135_p10 = scmp.lt.s32.totalorder (!%p115_p9), %s267_s13, 7  ;;  %s456_s26 = sshll.u32 (!%p115_p9), %s267_s13, 3 }
   0xe   : > { %118 = sbr.rel (%p115_p9) target bundleno = 392 (0x188), region = 28  ;;  %s141_s29 = scalar_lea.vmem (!%p115_p9), %s498_s1, %s456_s26 }
   0xf   : > { %s132_s30 = sand.u32 (!%p115_p9), 1, %s380_s10   ;;  %s202_s6 = scalar_lea.hbm (!%p115_p9), %s499_s2, %s456_s26 }
  0x10   : > { %s272_s3 = sshll.u32 (!%p115_p9), %s132_s30, 3  ;;  %s192_s14 = scalar_lea.sflag (!%p115_p9), [#allocation3], %s132_s30 }
  0x11   : > { %s134_s7 = scalar_lea.vmem (!%p115_p9), [#allocation2], %s272_s3  ;;  %s346_s23 = scalar_lea.hbm (!%p115_p9), %s499_s2, 64 }
  0x12   : > { %s204_s8 = sshll.u32 (!%p115_p9), %s134_s7, 4  ;;  %s205_s8 = int_to_ptr.vmem [resolvable:$true] %s204_s8 }
  0x13   : > { %v390_v0 = vmov 0   ;;  %s136_s21 = scalar_select %p135_p10, %s267_s13, 7  ;;  %vm143_vm0 = vcmask 261120   ;;  %v142_v3 = vld [vmem:[%s141_s29] sm:$0xff]  ;;  %v155_v8 = vlaneseq  ;;  %v391_v12 = vmov 0.0033333334  }
  0x14   : > { %320 = vset.pattern.permute.xlu0 %v390_v0  ;;  %321 = vset.pattern.permute.xlu2 %v390_v0  ;;  %v171_v18 = vstv %s456_s26  ;;  %vm174_vm3 = vcmp.ne.s32.totalorder %v142_v3, 0  ;;  %vm177_vm6 = vcmask 7168   ;;  %s206_s13 = sshll.u32 %s202_s6, 4  ;;  %s207_s13 = int_to_ptr.hbm [resolvable:$true] %s206_s13 }
  0x15   : > { %s273_s22 = sshll.u32 %s136_s21, 3  ;;  %v156_v10 = vand.u32 127, %v155_v8  ;;  %v170_v17 = vshrl.u32 %v155_v8, 7  ;;  %s340_s16 = sshra.s32 %s207_s13, 4  ;;  %s341_s16 = int_to_ptr.hbm [resolvable:$true] %s340_s16 }
  0x16   : > { %s138_s25 = scalar_lea.vmem %s497_s0, %s273_s22  ;;  %s342_s17 = scalar_lea.hbm %s341_s16, 8 }
  0x17   : > { %v139_v1 = vld [vmem:[%s138_s25] sm:$0xff]  ;;  %vm162_vm1 = vcmp.eq.s32.totalorder %v156_v10, 0  ;;  %v172_v19 = vadd.s32 %v171_v18, %v170_v17  ;;  %p343_p11 = scmp.ne.s32.totalorder %s341_s16, %s342_s17  ;;  %p347_p0 = scmp.lt.s32.totalorder %s341_s16, %s499_s2 }
  0x18   : > { %v144_v2 = vsel %vm143_vm0, %v139_v1, -inf  ;;  %p348_p1 = scmp.lt.s32.totalorder %s346_s23, %s342_s17 }
  0x19   : > { %145 = vmax.xlane.f32.xlu0 %v144_v2  ;;  %vm173_vm4 = vcmp.lt.s32.totalorder %v172_v19, 64  ;;  %p344_p12 = pnand %p343_p11, %p442_p5 }
  0x1a   : > { %vm175_vm5 = vmand %vm173_vm4, %vm174_vm3  ;;  %p349_p2 = por %p348_p1, %p347_p0 }
  0x1b   : > { %p345_p13 = pneg %p344_p12 }
  0x1d   : > { %p350_p3 = pnand %p349_p2, %p345_p13 }
  0x2d   : > { %158 = vperm.xlu0 %320, %v142_v3  }
  0x8c   : > { %v146_v4 = vpop.xlane.xlu0 %145 }
  0x8d   : > { %v147_v5 = vsub.f32 %v139_v1, %v146_v4 }
  0x8f   : > { %v148_v6 = vmul.f32 1.442695, %v147_v5 }
  0x91   : > { %322 = vpow2.f32 %v148_v6 }
  0x97   : > { %v323_v7 = vpop.eup %322 }
  0x98   : > { %v150_v9 = vsel %vm143_vm0, %v323_v7, 0.0 }
  0x99   : > { %151 = vadd.xlane.f32.xlu1 %v150_v9 }
  0x9f   : > { %v159_v11 = vpop.permute.xlu0 %158 }
  0xa0   : > { %vm160_vm2 = vcmp.eq.s32.totalorder %v156_v10, %v159_v11 }
  0xa1   : > { %v161_v13 = vsel %vm160_vm2, 0.9, %v391_v12 }
  0xa2   : > { %v163_v14 = vsel %vm162_vm1, 0.0, %v161_v13 }
  0xa3   : > { %v164_v15 = vmul.f32 %v163_v14, %v147_v5 }
  0xa5   : > { %v165_v16 = vsel %vm143_vm0, %v164_v15, 0.0 }
  0xa6   : > { %166 = vadd.xlane.f32.xlu1 %v165_v16 }
 0x10c   : > { %v152_v20 = vpop.xlane.xlu1 %151 }
 0x10d   : > { %324 = vlog2.f32 %v152_v20 }
 0x113   : > { %v325_v21 = vpop.eup %324 }
 0x114   : > { %v154_v22 = vmul.f32 0.6931472, %v325_v21 }
 0x119   : > { %v167_v23 = vpop.xlane.xlu1 %166 }
 0x11a   : > { %v168_v24 = vsub.f32 %v154_v22, %v167_v23 }
 0x11c   : > { %v176_v25 = vsel %vm175_vm5, %v168_v24, 0.0 }
 0x11d   : > { %v178_v26 = vsel %vm177_vm6, %v176_v25, 0.0 }
 0x11e   : > { %v179_v27 = vrot.slane %v178_v26, 4 }
 0x120   : > { %v180_v28 = vadd.f32 %v179_v27, %v178_v26 }
 0x122   : > { %v181_v29 = vrot.slane %v180_v28, 2 }
 0x124   : > { %v182_v30 = vadd.f32 %v181_v29, %v180_v28 }
 0x126   : > { %v183_v31 = vrot.slane %v182_v30, 1 }
 0x128   : > { %v184_v32 = vadd.f32 %v183_v31, %v182_v30 }
 0x12a   : > { %187 = vperm.xlu2 %321, %v184_v32  }
 0x184   : > { %v188_v33 = vpop.permute.xlu2 %187 }
 0x185   : > { %190 = vst [vmem:[%s134_s7] sm:$0xff] %v188_v33 }
 0x186   : > { %353 = shalt.err (!%p350_p3)
}
 0x187   : > { %279 = dma.vmem_to_hbm [thread:$0]  (%p442_p5), %s205_s8, 128, %s207_s13, %s192_s14  }
 0x188 PF: > { %p285_p4 = scmp.ge.s32.totalorder %s388_s12, 2  ;;  %s218_s26 = sand.u32 1, %s376_s9  }
 0x189   : > { %s219_s27 = scalar_lea.sflag [#allocation3], %s218_s26 }
 0x18a   : > { %p282_p7 = pnand %p285_p4, %p446_p6 }
 0x18c   : > { %p283_p8 = pneg %p282_p7 }
 0x18e   : > { %371 = dma.done.wait (%p283_p8), %s219_s27, 128  }
 0x18f   : > { %373 = vsyncadd (%p283_p8), %s219_s27, 4294967168  ;;  %p12_p9 = scmp.ge.s32.totalorder %s430_s15, 10   ;;  %s502_s9 = smov %s380_s10 }
 0x190   : > { %s503_s10 = smov %s384_s11  ;;  %s504_s11 = smov %s440_s18 }
 0x191   : > { %s505_s12 = smov %s430_s15  ;;  %14 = sbr.rel (!%p12_p9) target bundleno = 3 (0x3), region = 64 }
 0x196   :  { %225 = vsyncpa [#allocation3], 1 }
 0x197   :  { %227 = vsyncpa [#allocation3 + $0x1], 1 }

</bundles_post_ra>
